<compile_context>
chip_gen: v7x
topology: tpu7x:2x2x1
jax: 0.10.0
libtpu: 0.0.40
codegen_flags: <defaults>
</compile_context>

<pallas_src>
import functools

import jax
import jax.numpy as jnp
from jax import lax
from jax.experimental import pallas as pl
from jax.experimental.pallas import tpu as pltpu


def classifier_block_kernel(v1_ref, v2_ref, w_rows_ref, small_ref, out_ref):
    # Upcast in-kernel: inputs may be bf16 (half the HBM traffic), compute f32.
    v1 = v1_ref[...].astype(jnp.float32)               # [TB, D]
    v2 = v2_ref[...].astype(jnp.float32)               # [TB, D]

    # use_sum feature: vec1 + vec2 -> [TB, D]
    vec_sum = v1 + v2

    # use_dist feature: ||v1 - v2|| computed directly (no cancellation).
    delta = v1 - v2
    vec_dist = jnp.sqrt(jnp.sum(delta * delta, axis=-1, keepdims=True))  # [TB,1]

    # use_cos feature: <v1,v2> * rsqrt(||v1||^2) * rsqrt(||v2||^2)
    # (two EUP rsqrts; avoids overflow of the product of squared norms).
    ip12 = jnp.sum(v1 * v2, axis=-1, keepdims=True)
    inv_n1 = lax.rsqrt(jnp.sum(v1 * v1, axis=-1, keepdims=True))
    inv_n2 = lax.rsqrt(jnp.sum(v2 * v2, axis=-1, keepdims=True))
    vec_cos = ip12 * inv_n1 * inv_n2                    # [TB, 1]

    # fc_classify on the D-wide part: lane-dense broadcast-multiply + row
    # reduction per output column (VPU/XLU, hidden under DMA) instead of a
    # lane-padded [D, 2] MXU matmul.
    w = w_rows_ref[...].astype(jnp.float32)             # [2, D] resident
    col0 = jnp.sum(vec_sum * w[0:1, :], axis=-1, keepdims=True)   # [TB, 1]
    col1 = jnp.sum(vec_sum * w[1:2, :], axis=-1, keepdims=True)   # [TB, 1]
    cols = jnp.concatenate([col0, col1], axis=-1)                 # [TB, 2]

    small = small_ref[...]                               # [3, 2] resident
    out = (cols
           + vec_dist * small[0:1, :]                    # broadcast [TB,1]*[1,2]
           + vec_cos * small[1:2, :]
           + small[2:3, :])
    out_ref[...] = out.astype(out_ref.dtype)


@functools.lru_cache(maxsize=1)
def _vmem_capacity_bytes():
    """Per-TensorCore VMEM capacity (128 MiB v5e/v6e, 64 MiB v7x)."""
    try:
        info = pltpu.get_tpu_info()
        return int(getattr(info, "vmem_capacity_bytes", 64 << 20))
    except Exception:
        return 64 << 20


def _plan_tiles(B, D, itemsize, tile_b=None):
    """Pick (tile_b, vmem_limit_bytes).

    Blocks are sized by bytes (~8 MiB per input block) and clipped to a
    per-generation pipeline budget of ~5/8 of VMEM (v7x: ~40 MiB of 64,
    v5e/v6e: ~80 MiB of 128) for 2 inputs x 2 pipeline buffers.  When B > 8
    the grid is forced to >= 2 steps so both v7x TensorCores get work.
    """
    vmem_cap = _vmem_capacity_bytes()
    pipeline_budget = (vmem_cap * 5) // 8

    if tile_b is None:
        block_budget = min(8 << 20, pipeline_budget // 4)  # per input block
        tile_b = max(8, ((block_budget // (D * itemsize)) // 8) * 8)
        if B <= 8:
            tile_b = B                                      # single full block
        else:
            half = ((-(-B // 2)) + 7) // 8 * 8              # ceil(B/2) -> mult of 8
            tile_b = min(tile_b, half)                      # >= 2 grid steps

    # 2 inputs x 2 pipeline buffers + slack for weights/output/compiler scratch.
    need = 2 * 2 * tile_b * D * itemsize + (8 << 20)
    vmem_limit = int(min(max(need, 32 << 20), vmem_cap - (8 << 20)))
    return tile_b, vmem_limit


@functools.partial(jax.jit, static_argnames=("tile_b",))
def classifier_block(vec1, vec2, weight, bias, tile_b=None):
    """vec1, vec2: [B, D] f32 or bf16. weight: [2, D+2] (PyTorch Linear layout),
    bias: [2]. Returns [B, 2] float32."""
    B, D = vec1.shape
    itemsize = jnp.dtype(vec1.dtype).itemsize
    tile_b, vmem_limit = _plan_tiles(B, D, itemsize, tile_b)
    grid = (pl.cdiv(B, tile_b),)

    # Parameter prep (fused into the jit; tiny).
    w_rows = weight[:, :D]                                      # [2, D] lane-dense
    small = jnp.stack([weight[:, D], weight[:, D + 1], bias], axis=0)  # [3, 2]

    return pl.pallas_call(
        classifier_block_kernel,
        out_shape=jax.ShapeDtypeStruct((B, 2), jnp.float32),
        grid=grid,
        in_specs=[
            pl.BlockSpec((tile_b, D), lambda i: (i, 0)),        # vec1 (pipelined)
            pl.BlockSpec((tile_b, D), lambda i: (i, 0)),        # vec2 (pipelined)
            pl.BlockSpec((2, D), lambda i: (0, 0)),             # W rows (resident)
            pl.BlockSpec((3, 2), lambda i: (0, 0)),             # w_dist/w_cos/bias
        ],
        out_specs=pl.BlockSpec((tile_b, 2), lambda i: (i, 0)),
        compiler_params=pltpu.CompilerParams(
            dimension_semantics=("parallel",),                  # megacore on v7x
            vmem_limit_bytes=vmem_limit,
        ),
    )(vec1, vec2, w_rows, small)


def classifier_block_ref(vec1, vec2, weight, bias):
    """Pure-JAX reference mirroring the (fixed) PyTorch forward."""
    vec1 = vec1.astype(jnp.float32)
    vec2 = vec2.astype(jnp.float32)
    vec_sum = vec1 + vec2
    delta = vec1 - vec2
    vec_dist = jnp.sqrt(jnp.sum(delta * delta, axis=-1, keepdims=True))
    ip12 = jnp.sum(vec1 * vec2, axis=-1, keepdims=True)
    ip11 = jnp.sum(vec1 * vec1, axis=-1, keepdims=True)
    ip22 = jnp.sum(vec2 * vec2, axis=-1, keepdims=True)
    vec_cos = ip12 / jnp.sqrt(ip11) / jnp.sqrt(ip22)
    feats = jnp.concatenate([vec_sum, vec_dist, vec_cos], axis=1)
    return feats @ weight.T + bias


if __name__ == "__main__":
    key = jax.random.PRNGKey(0)

    # --- Case 1: small shape consistent with the module (single grid step). ---
    B, D = 8, 32                       # cfg.classifier_in = D
    fc_in = D + 1 + 1                  # use_sum + use_dist + use_cos
    k1, k2, kw, kb = jax.random.split(key, 4)
    vec1 = jax.random.normal(k1, (B, D), dtype=jnp.float32)
    vec2 = jax.random.normal(k2, (B, D), dtype=jnp.float32)
    weight = jax.random.normal(kw, (2, fc_in), dtype=jnp.float32) * 0.1
    bias = jax.random.normal(kb, (2,), dtype=jnp.float32) * 0.1

    out = jax.block_until_ready(classifier_block(vec1, vec2, weight, bias))
    ref = classifier_block_ref(vec1, vec2, weight, bias)
    assert out.shape == (B, 2)
    assert jnp.allclose(out, ref, atol=5e-5, rtol=1e-4), (out, ref)

    # --- Case 2: automatic tile planning (>=2 grid steps, partial last tile). ---
    B2, D2 = 40, 128
    fc_in2 = D2 + 2
    k1, k2, kw, kb = jax.random.split(jax.random.PRNGKey(1), 4)
    v1b = jax.random.normal(k1, (B2, D2), dtype=jnp.float32)
    v2b = jax.random.normal(k2, (B2, D2), dtype=jnp.float32)
    w2 = jax.random.normal(kw, (2, fc_in2), dtype=jnp.float32) * 0.1
    b2 = jax.random.normal(kb, (2,), dtype=jnp.float32) * 0.1

    out2 = jax.block_until_ready(classifier_block(v1b, v2b, w2, b2))
    ref2 = classifier_block_ref(v1b, v2b, w2, b2)
    assert out2.shape == (B2, 2)
    assert jnp.allclose(out2, ref2, atol=5e-5, rtol=1e-4), (out2, ref2)

    # --- Case 3: explicit tile + bf16 inputs (half HBM traffic path). ---
    B3, D3 = 24, 256
    fc_in3 = D3 + 2
    k1, k2, kw, kb = jax.random.split(jax.random.PRNGKey(2), 4)
    v1c = jax.random.normal(k1, (B3, D3), dtype=jnp.float32).astype(jnp.bfloat16)
    v2c = jax.random.normal(k2, (B3, D3), dtype=jnp.float32).astype(jnp.bfloat16)
    w3 = jax.random.normal(kw, (2, fc_in3), dtype=jnp.float32) * 0.1
    b3 = jax.random.normal(kb, (2,), dtype=jnp.float32) * 0.1

    out3 = jax.block_until_ready(classifier_block(v1c, v2c, w3, b3, tile_b=16))
    ref3 = classifier_block_ref(v1c, v2c, w3, b3)   # ref upcasts bf16 -> f32 too
    assert out3.shape == (B3, 2)
    assert jnp.allclose(out3, ref3, atol=5e-4, rtol=1e-3), (out3, ref3)

    print("KERNEL_OK")
</pallas_src>

<mosaic_0001>
module attributes {stable_mosaic.version = 11 : i64} {
  func.func @classifier_block_kernel(%arg0: i32, %arg1: memref<8x32xf32, #tpu.memory_space<vmem>>, %arg2: memref<8x32xf32, #tpu.memory_space<vmem>>, %arg3: memref<2x32xf32, #tpu.memory_space<vmem>>, %arg4: memref<3x2xf32, #tpu.memory_space<vmem>>, %arg5: memref<8x2xf32, #tpu.memory_space<vmem>>) attributes {dimension_semantics = [#tpu.dimension_semantics<parallel>], iteration_bounds = array<i64: 1>, scalar_prefetch = 0 : i64, scratch_operands = 0 : i64, tpu.core_type = #tpu.core_type<tc>, window_params = [{transform_indices = @transform_0, window_bounds = array<i64: 8, 32>}, {transform_indices = @transform_1, window_bounds = array<i64: 8, 32>}, {pipeline_mode = #tpu.pipeline_mode<synchronous>, transform_indices = @transform_2, window_bounds = array<i64: 2, 32>}, {pipeline_mode = #tpu.pipeline_mode<synchronous>, transform_indices = @transform_3, window_bounds = array<i64: 3, 2>}, {transform_indices = @transform_4, window_bounds = array<i64: 8, 2>}]} {
    %c0 = arith.constant 0 : index
    %c0_0 = arith.constant 0 : index
    %0 = vector.load %arg1[%c0, %c0_0] : memref<8x32xf32, #tpu.memory_space<vmem>>, vector<8x32xf32>
    %c0_1 = arith.constant 0 : index
    %c0_2 = arith.constant 0 : index
    %1 = vector.load %arg2[%c0_1, %c0_2] : memref<8x32xf32, #tpu.memory_space<vmem>>, vector<8x32xf32>
    %2 = arith.addf %0, %1 : vector<8x32xf32>
    %3 = arith.subf %0, %1 : vector<8x32xf32>
    %4 = arith.mulf %3, %3 : vector<8x32xf32>
    %cst = arith.constant dense<0.000000e+00> : vector<8xf32>
    %5 = vector.multi_reduction <add>, %4, %cst [1] : vector<8x32xf32> to vector<8xf32>
    %6 = vector.shape_cast %5 : vector<8xf32> to vector<8x1xf32>
    %7 = math.sqrt %6 : vector<8x1xf32>
    %8 = arith.mulf %0, %1 : vector<8x32xf32>
    %cst_3 = arith.constant dense<0.000000e+00> : vector<8xf32>
    %9 = vector.multi_reduction <add>, %8, %cst_3 [1] : vector<8x32xf32> to vector<8xf32>
    %10 = vector.shape_cast %9 : vector<8xf32> to vector<8x1xf32>
    %11 = arith.mulf %0, %0 : vector<8x32xf32>
    %cst_4 = arith.constant dense<0.000000e+00> : vector<8xf32>
    %12 = vector.multi_reduction <add>, %11, %cst_4 [1] : vector<8x32xf32> to vector<8xf32>
    %13 = vector.shape_cast %12 : vector<8xf32> to vector<8x1xf32>
    %14 = math.rsqrt %13 : vector<8x1xf32>
    %15 = arith.mulf %1, %1 : vector<8x32xf32>
    %cst_5 = arith.constant dense<0.000000e+00> : vector<8xf32>
    %16 = vector.multi_reduction <add>, %15, %cst_5 [1] : vector<8x32xf32> to vector<8xf32>
    %17 = vector.shape_cast %16 : vector<8xf32> to vector<8x1xf32>
    %18 = math.rsqrt %17 : vector<8x1xf32>
    %19 = arith.mulf %10, %14 : vector<8x1xf32>
    %20 = arith.mulf %19, %18 : vector<8x1xf32>
    %c0_6 = arith.constant 0 : index
    %c0_7 = arith.constant 0 : index
    %21 = vector.load %arg3[%c0_6, %c0_7] : memref<2x32xf32, #tpu.memory_space<vmem>>, vector<2x32xf32>
    %22 = vector.extract_strided_slice %21 {offsets = [0, 0], sizes = [1, 32], strides = [1, 1]} : vector<2x32xf32> to vector<1x32xf32>
    %23 = vector.broadcast %22 : vector<1x32xf32> to vector<8x32xf32>
    %24 = arith.mulf %2, %23 : vector<8x32xf32>
    %cst_8 = arith.constant dense<0.000000e+00> : vector<8xf32>
    %25 = vector.multi_reduction <add>, %24, %cst_8 [1] : vector<8x32xf32> to vector<8xf32>
    %26 = vector.shape_cast %25 : vector<8xf32> to vector<8x1xf32>
    %27 = vector.extract_strided_slice %21 {offsets = [1, 0], sizes = [1, 32], strides = [1, 1]} : vector<2x32xf32> to vector<1x32xf32>
    %28 = vector.broadcast %27 : vector<1x32xf32> to vector<8x32xf32>
    %29 = arith.mulf %2, %28 : vector<8x32xf32>
    %cst_9 = arith.constant dense<0.000000e+00> : vector<8xf32>
    %30 = vector.multi_reduction <add>, %29, %cst_9 [1] : vector<8x32xf32> to vector<8xf32>
    %31 = vector.shape_cast %30 : vector<8xf32> to vector<8x1xf32>
    %32 = tpu.concatenate %26, %31 in 1 : vector<8x1xf32>, vector<8x1xf32> -> vector<8x2xf32>
    %c0_10 = arith.constant 0 : index
    %c0_11 = arith.constant 0 : index
    %33 = vector.load %arg4[%c0_10, %c0_11] : memref<3x2xf32, #tpu.memory_space<vmem>>, vector<3x2xf32>
    %34 = vector.extract_strided_slice %33 {offsets = [0, 0], sizes = [1, 2], strides = [1, 1]} : vector<3x2xf32> to vector<1x2xf32>
    %35 = vector.broadcast %7 : vector<8x1xf32> to vector<8x2xf32>
    %36 = vector.broadcast %34 : vector<1x2xf32> to vector<8x2xf32>
    %37 = arith.mulf %35, %36 : vector<8x2xf32>
    %38 = arith.addf %32, %37 : vector<8x2xf32>
    %39 = vector.extract_strided_slice %33 {offsets = [1, 0], sizes = [1, 2], strides = [1, 1]} : vector<3x2xf32> to vector<1x2xf32>
    %40 = vector.broadcast %20 : vector<8x1xf32> to vector<8x2xf32>
    %41 = vector.broadcast %39 : vector<1x2xf32> to vector<8x2xf32>
    %42 = arith.mulf %40, %41 : vector<8x2xf32>
    %43 = arith.addf %38, %42 : vector<8x2xf32>
    %44 = vector.extract_strided_slice %33 {offsets = [2, 0], sizes = [1, 2], strides = [1, 1]} : vector<3x2xf32> to vector<1x2xf32>
    %45 = vector.broadcast %44 : vector<1x2xf32> to vector<8x2xf32>
    %46 = arith.addf %43, %45 : vector<8x2xf32>
    %c0_12 = arith.constant 0 : index
    %c0_13 = arith.constant 0 : index
    %47 = vector.load %arg5[%c0_12, %c0_13] : memref<8x2xf32, #tpu.memory_space<vmem>>, vector<8x2xf32>
    tpu.vector_store %arg5[%c0_12, %c0_13], %46 {strides = array<i32>} : memref<8x2xf32, #tpu.memory_space<vmem>>, vector<8x2xf32>,
    return
  }
  func.func @transform_0(%arg0: i32) -> (i32, i32) {
    %c0_i32 = arith.constant 0 : i32
    %c0_i32_0 = arith.constant 0 : i32
    return %arg0, %c0_i32 : i32, i32
  }
  func.func @transform_1(%arg0: i32) -> (i32, i32) {
    %c0_i32 = arith.constant 0 : i32
    %c0_i32_0 = arith.constant 0 : i32
    return %arg0, %c0_i32 : i32, i32
  }
  func.func @transform_2(%arg0: i32) -> (i32, i32) {
    %c0_i32 = arith.constant 0 : i32
    %c0_i32_0 = arith.constant 0 : i32
    %c0_i32_1 = arith.constant 0 : i32
    return %c0_i32, %c0_i32_0 : i32, i32
  }
  func.func @transform_3(%arg0: i32) -> (i32, i32) {
    %c0_i32 = arith.constant 0 : i32
    %c0_i32_0 = arith.constant 0 : i32
    %c0_i32_1 = arith.constant 0 : i32
    return %c0_i32, %c0_i32_0 : i32, i32
  }
  func.func @transform_4(%arg0: i32) -> (i32, i32) {
    %c0_i32 = arith.constant 0 : i32
    %c0_i32_0 = arith.constant 0 : i32
    return %arg0, %c0_i32 : i32, i32
  }
}

</mosaic_0001>

<bundles_post_ra>
// kernel: classifier_block.1
= control target key start
LH: loop header
LB: loop body
LE: loop exit
PB: predicated region body
PF: predicated region fallthrough
CT: control target
= control target key end

     0   :  { %v50_v0 = vlaneseq  ;;  %vm22_vm0 = vcmask 261120   ;;  %vm66_vm3 = vcmask 7168   ;;  %vm86_vm4 = vcmask 15360   ;;  %s144_s0 = inlined_call_operand.vmem [shape: f32[8,32], index: 0, kind: input, shape index: {}]   ;;  %s145_s1 = inlined_call_operand.vmem [shape: f32[8,32], index: 1, kind: input, shape index: {}]   ;;  %s146_s2 = inlined_call_operand.vmem [shape: f32[2,32], index: 2, kind: input, shape index: {}]   ;;  %s147_s3 = inlined_call_operand.vmem [shape: f32[3,2], index: 3, kind: input, shape index: {}]   ;;  %s148_s4 = inlined_call_operand.vmem [shape: f32[8,2], index: 4, kind: output, shape index: {}]  }
   0x1   :  { %v17_v1 = vld [vmem:[%s144_s0] sm:$0xff] }
   0x2   :  { %v18_v2 = vld [vmem:[%s145_s1] sm:$0xff]  ;;  %v51_v6 = vshrl.u32 %v50_v0, 7  ;;  %v37_v8 = vmul.f32 %v17_v1, %v17_v1 }
   0x3   :  { %v20_v3 = vsub.f32 %v17_v1, %v18_v2  ;;  %v42_v4 = vmul.f32 %v18_v2, %v18_v2  ;;  %v33_v5 = vmul.f32 %v18_v2, %v17_v1  ;;  %v49_v10 = vld [vmem:[%s146_s2] sm:$0x3]  ;;  %v19_v11 = vadd.f32 %v18_v2, %v17_v1 }
   0x4   :  { %v60_v12 = vsub.s32 1, %v51_v6  ;;  %v52_v13 = vsub.s32 0, %v51_v6  ;;  %v38_v18 = vsel %vm22_vm0, %v37_v8, 0.0  ;;  %v68_v27 = vld [vmem:[%s147_s3] sm:$0x7]  ;;  %v83_v41 = vsub.s32 2, %v51_v6 }
   0x5   :  { %v21_v7 = vmul.f32 %v20_v3, %v20_v3  ;;  %v43_v9 = vsel %vm22_vm0, %v42_v4, 0.0  ;;  %v34_v15 = vsel %vm22_vm0, %v33_v5, 0.0 }
   0x6   :  { %44 = vadd.xlane.f32.xlu1 %v43_v9  ;;  %v61_v16 = vrot.slane %v49_v10, %v60_v12  ;;  %v53_v17 = vrot.slane %v49_v10, %v52_v13  ;;  %v72_v30 = vrot.slane %v68_v27, %v52_v13  ;;  %v78_v38 = vrot.slane %v68_v27, %v60_v12 }
   0x7   :  { %v23_v14 = vsel %vm22_vm0, %v21_v7, 0.0  ;;  %v84_v45 = vrot.slane %v68_v27, %v83_v41 }
   0x8   :  { %24 = vadd.xlane.f32.xlu0 %v23_v14  ;;  %v62_v19 = vmul.f32 %v61_v16, %v19_v11  ;;  %v54_v20 = vmul.f32 %v53_v17, %v19_v11 }
   0xa   :  { %35 = vadd.xlane.f32.xlu1 %v34_v15  ;;  %v63_v21 = vsel %vm22_vm0, %v62_v19, 0.0  ;;  %v55_v22 = vsel %vm22_vm0, %v54_v20, 0.0 }
   0xc   :  { %39 = vadd.xlane.f32.xlu0 %v38_v18 }
   0xe   :  { %64 = vadd.xlane.f32.xlu1 %v63_v21 }
  0x10   :  { %56 = vadd.xlane.f32.xlu0 %v55_v22 }
  0x93   :  { %v45_v24 = vpop.xlane.xlu1 %44 }
  0x95   :  { %v25_v23 = vpop.xlane.xlu0 %24 }
  0x96   :  { %92 = vrsqrt.f32 %v25_v23  ;;  %vm28_vm1 = vcmp.eq.f32.partialorder %v25_v23, inf  ;;  %v31_v31 = vand.u32 2147483648, %v25_v23  ;;  %vm30_vm2 = vcmp.eq.f32.partialorder %v25_v23, 0.0 }
  0x97   :  { %94 = vrsqrt.f32 %v45_v24  ;;  %v36_v26 = vpop.xlane.xlu1 %35 }
  0x99   :  { %v40_v25 = vpop.xlane.xlu0 %39 }
  0x9a   :  { %96 = vrsqrt.f32 %v40_v25 }
  0x9b   :  { %v65_v33 = vpop.xlane.xlu1 %64 }
  0x9d   :  { %v57_v35 = vpop.xlane.xlu0 %56 }
  0x9e   :  { %v67_v42 = vsel %vm66_vm3, %v57_v35, %v65_v33 }
  0xa0   :  { %v93_v28 = vpop.eup %92 }
  0xa1   :  { %v27_v29 = vmul.f32 %v93_v28, %v25_v23  ;;  %v95_v32 = vpop.eup %94 }
  0xa3   :  { %v29_v34 = vsel %vm28_vm1, %v25_v23, %v27_v29 }
  0xa4   :  { %v97_v36 = vpop.eup %96  ;;  %v32_v37 = vsel %vm30_vm2, %v31_v31, %v29_v34 }
  0xa5   :  { %v47_v39 = vmul.f32 %v97_v36, %v36_v26  ;;  %v73_v40 = vmul.f32 %v72_v30, %v32_v37 }
  0xa7   :  { %v48_v43 = vmul.f32 %v95_v32, %v47_v39  ;;  %v74_v46 = vadd.f32 %v73_v40, %v67_v42 }
  0xa9   :  { %v79_v44 = vmul.f32 %v78_v38, %v48_v43 }
  0xab   :  { %v80_v47 = vadd.f32 %v79_v44, %v74_v46 }
  0xad   :  { %v85_v48 = vadd.f32 %v84_v45, %v80_v47 }
  0xaf   :  { %87 = vst.msk [vmem:[%s148_s4] sm:$0xff] %vm86_vm4, %v85_v48 }

</bundles_post_ra>
